<compile_context>
chip_gen: v7x
topology: tpu7x:2x2x1
jax: 0.10.0
libtpu: 0.0.40
codegen_flags: <defaults>
</compile_context>

<pallas_src>
import jax
import jax.numpy as jnp
from jax.experimental import pallas as pl
from jax.experimental.pallas import tpu as pltpu

EPS = 1e-5


def _wrapped_kernel(x_ref, w_ref, aw_ref, ab_ref, inv_aw_ref, o_ref):
    # x_ref      : (S, T)     lane-packed input columns (T = lane tile of B*F)
    # w_ref      : (P, S+1)   linear weight with the bias folded in as last column
    # aw_ref     : (1, T)     RevIN affine weight per column
    # ab_ref     : (1, T)     RevIN affine bias per column
    # inv_aw_ref : (1, T)     precomputed 1 / (affine_w + EPS**2)
    # o_ref      : (P, T)     lane-dense output tile
    x = x_ref[...].astype(jnp.float32)                        # (S, T)

    # ---- trafo 'norm': per-column stats over time (sublane reduce) + affine ----
    mean = jnp.mean(x, axis=0, keepdims=True)                 # (1, T)
    var = jnp.mean((x - mean) ** 2, axis=0, keepdims=True)    # population variance
    inv_std = jax.lax.rsqrt(var + EPS)                        # EUP, no divide
    stdev = jnp.sqrt(var + EPS)                               # reused for denorm
    xn = (x - mean) * inv_std
    xn = xn * aw_ref[...] + ab_ref[...]                       # (S, T)

    # ---- model: Linear(seq_len -> pred_len); bias folded into the contraction ----
    mm_dtype = w_ref.dtype                                    # bf16 (default) or f32
    ones_row = jnp.ones((1, xn.shape[1]), mm_dtype)
    xn_aug = jnp.concatenate([xn.astype(mm_dtype), ones_row], axis=0)   # (S+1, T)
    y = jnp.dot(w_ref[...], xn_aug, preferred_element_type=jnp.float32)  # (P, T)

    # ---- trafo 'denorm': undo affine (multiply, no divide), restore scale/mean ----
    y = (y - ab_ref[...]) * inv_aw_ref[...]
    y = y * stdev + mean
    o_ref[...] = y.astype(o_ref.dtype)


def _round_up(n, m):
    return ((n + m - 1) // m) * m


def wrapped_model(x, lin_w, lin_b, affine_w, affine_b, pred_len,
                  matmul_dtype=jnp.bfloat16, lane_tile=512):
    """norm -> Linear(S->P) along time -> denorm, lane-packed over batch*features.

    lane_tile: columns of B*F processed per grid step (multiple of 128).
               512 works across v5e/v6e/v7x; v6e can use 1024 if B*F is large.
    """
    B, S, F = x.shape
    P = pred_len
    N = B * F

    assert lane_tile % 128 == 0, "lane_tile must be a multiple of 128"
    n128 = _round_up(N, 128)
    if n128 >= lane_tile:
        tile = lane_tile
        n_pad = _round_up(n128, lane_tile)
    else:
        tile = n128
        n_pad = n128

    # --- one-time layout plumbing (outside the kernel) ---
    x2 = jnp.transpose(x, (1, 0, 2)).reshape(S, N).astype(jnp.float32)
    if n_pad > N:
        x2 = jnp.pad(x2, ((0, 0), (0, n_pad - N)))            # padded cols are inert

    aw = jnp.tile(affine_w.astype(jnp.float32), B)             # column b*F+f -> aw[f]
    ab = jnp.tile(affine_b.astype(jnp.float32), B)
    if n_pad > N:
        aw = jnp.pad(aw, (0, n_pad - N), constant_values=1.0)
        ab = jnp.pad(ab, (0, n_pad - N))
    inv_aw = 1.0 / (aw + EPS * EPS)                            # precomputed reciprocal
    aw2 = aw.reshape(1, n_pad)
    ab2 = ab.reshape(1, n_pad)
    inv_aw2 = inv_aw.reshape(1, n_pad)

    # Fold the linear bias into the weight: W_aug = [W | b], contraction dim S+1.
    w_aug = jnp.concatenate([lin_w, lin_b[:, None]], axis=1).astype(matmul_dtype)

    grid = (n_pad // tile,)

    # Explicit VMEM budget: double-buffered blocks + in-kernel temporaries, with
    # headroom; capped well below v7x's 64 MiB physical VMEM.
    wb = jnp.dtype(matmul_dtype).itemsize
    est = (2 * S * tile * 4            # x blocks (double-buffered)
           + 2 * P * tile * 4          # output blocks
           + 2 * P * (S + 1) * wb      # resident weight (still double-buffered)
           + 2 * 3 * tile * 4          # aw / ab / inv_aw blocks
           + (S + 1) * tile * wb       # xn_aug temporary
           + 4 * (S + 1) * tile * 4)   # f32 temporaries (x, xn, y, ...)
    vmem_limit = int(min(max(4 * est, 32 * 1024 * 1024), 48 * 1024 * 1024))

    out2 = pl.pallas_call(
        _wrapped_kernel,
        out_shape=jax.ShapeDtypeStruct((P, n_pad), x.dtype),
        grid_spec=pltpu.PrefetchScalarGridSpec(
            num_scalar_prefetch=0,
            grid=grid,
            in_specs=[
                pl.BlockSpec((S, tile), lambda c: (0, c)),       # activations
                pl.BlockSpec((P, S + 1), lambda c: (0, 0)),      # resident weight
                pl.BlockSpec((1, tile), lambda c: (0, c)),       # affine weight
                pl.BlockSpec((1, tile), lambda c: (0, c)),       # affine bias
                pl.BlockSpec((1, tile), lambda c: (0, c)),       # 1/(aw + eps^2)
            ],
            out_specs=pl.BlockSpec((P, tile), lambda c: (0, c)),
        ),
        compiler_params=pltpu.CompilerParams(
            dimension_semantics=("parallel",),   # shards lane chunks across TCs (v7x)
            vmem_limit_bytes=vmem_limit,
        ),
    )(x2, w_aug, aw2, ab2, inv_aw2)

    # --- unpack lanes: (P, B*F) -> (B, P, F) ---
    out = out2[:, :N].reshape(P, B, F).transpose(1, 0, 2)
    return out.astype(x.dtype)


def wrapped_model_ref(x, lin_w, lin_b, affine_w, affine_b):
    # Pure-JAX reference (mirrors the PyTorch RevIN + Linear wrapper, f32 throughout).
    mean = jnp.mean(x, axis=1, keepdims=True)
    stdev = jnp.sqrt(jnp.var(x, axis=1, keepdims=True) + EPS)
    xn = (x - mean) / stdev
    xn = xn * affine_w + affine_b
    y = jnp.einsum("bsf,ps->bpf", xn, lin_w) + lin_b[None, :, None]
    y = (y - affine_b) / (affine_w + EPS * EPS)
    y = y * stdev + mean
    return y


if __name__ == "__main__":
    B, S, F, P = 2, 16, 4, 8  # batch, seq_len, features, pred_len

    key = jax.random.PRNGKey(0)
    kx, kw, kb = jax.random.split(key, 3)

    x = jax.random.normal(kx, (B, S, F), dtype=jnp.float32)
    # nn.Linear(S, P) style init (deterministic)
    lin_w = jax.random.uniform(kw, (P, S), jnp.float32, -1.0, 1.0) / jnp.sqrt(S)
    lin_b = jax.random.uniform(kb, (P,), jnp.float32, -1.0, 1.0) / jnp.sqrt(S)
    # RevIN affine params (PyTorch init: ones / zeros)
    affine_w = jnp.ones((F,), jnp.float32)
    affine_b = jnp.zeros((F,), jnp.float32)

    ref = wrapped_model_ref(x, lin_w, lin_b, affine_w, affine_b)

    # Exact path (f32 MXU inputs): must match the f32 reference tightly.
    out_f32 = wrapped_model(x, lin_w, lin_b, affine_w, affine_b, P,
                            matmul_dtype=jnp.float32)
    out_f32 = jax.block_until_ready(out_f32)
    assert out_f32.shape == (B, P, F)
    assert jnp.allclose(out_f32, ref, atol=1e-4, rtol=1e-4), "f32 path mismatch"

    # Default fast path (bf16 MXU inputs, f32 accumulation): looser tolerance is
    # expected from the bf16 input rounding (~1e-3 level on normalized data).
    out_bf16 = wrapped_model(x, lin_w, lin_b, affine_w, affine_b, P)
    out_bf16 = jax.block_until_ready(out_bf16)
    assert out_bf16.shape == (B, P, F)
    assert jnp.allclose(out_bf16, ref, atol=5e-2, rtol=5e-2), "bf16 path mismatch"

    print("KERNEL_OK")
</pallas_src>

<mosaic_0001>
module attributes {stable_mosaic.version = 11 : i64} {
  func.func @_wrapped_kernel(%arg0: i32, %arg1: memref<16x128xf32, #tpu.memory_space<vmem>>, %arg2: memref<8x17xf32, #tpu.memory_space<vmem>>, %arg3: memref<1x128xf32, #tpu.memory_space<vmem>>, %arg4: memref<1x128xf32, #tpu.memory_space<vmem>>, %arg5: memref<1x128xf32, #tpu.memory_space<vmem>>, %arg6: memref<8x128xf32, #tpu.memory_space<vmem>>) attributes {dimension_semantics = [#tpu.dimension_semantics<parallel>], iteration_bounds = array<i64: 1>, scalar_prefetch = 0 : i64, scratch_operands = 0 : i64, tpu.core_type = #tpu.core_type<tc>, window_params = [{transform_indices = @transform_0, window_bounds = array<i64: 16, 128>}, {pipeline_mode = #tpu.pipeline_mode<synchronous>, transform_indices = @transform_1, window_bounds = array<i64: 8, 17>}, {transform_indices = @transform_2, window_bounds = array<i64: 1, 128>}, {transform_indices = @transform_3, window_bounds = array<i64: 1, 128>}, {transform_indices = @transform_4, window_bounds = array<i64: 1, 128>}, {transform_indices = @transform_5, window_bounds = array<i64: 8, 128>}]} {
    %c0 = arith.constant 0 : index
    %c0_0 = arith.constant 0 : index
    %0 = vector.load %arg1[%c0, %c0_0] : memref<16x128xf32, #tpu.memory_space<vmem>>, vector<16x128xf32>
    %cst = arith.constant dense<0.000000e+00> : vector<128xf32>
    %1 = vector.multi_reduction <add>, %0, %cst [0] : vector<16x128xf32> to vector<128xf32>
    %2 = vector.shape_cast %1 : vector<128xf32> to vector<1x128xf32>
    %cst_1 = arith.constant 1.600000e+01 : f32
    %3 = vector.broadcast %cst_1 : f32 to vector<1x128xf32>
    %4 = arith.divf %2, %3 : vector<1x128xf32>
    %5 = vector.broadcast %4 : vector<1x128xf32> to vector<16x128xf32>
    %6 = arith.subf %0, %5 : vector<16x128xf32>
    %7 = arith.mulf %6, %6 : vector<16x128xf32>
    %cst_2 = arith.constant dense<0.000000e+00> : vector<128xf32>
    %8 = vector.multi_reduction <add>, %7, %cst_2 [0] : vector<16x128xf32> to vector<128xf32>
    %9 = vector.shape_cast %8 : vector<128xf32> to vector<1x128xf32>
    %cst_3 = arith.constant 1.600000e+01 : f32
    %10 = vector.broadcast %cst_3 : f32 to vector<1x128xf32>
    %11 = arith.divf %9, %10 : vector<1x128xf32>
    %cst_4 = arith.constant 9.99999974E-6 : f32
    %12 = vector.broadcast %cst_4 : f32 to vector<1x128xf32>
    %13 = arith.addf %11, %12 : vector<1x128xf32>
    %14 = math.rsqrt %13 : vector<1x128xf32>
    %cst_5 = arith.constant 9.99999974E-6 : f32
    %15 = vector.broadcast %cst_5 : f32 to vector<1x128xf32>
    %16 = arith.addf %11, %15 : vector<1x128xf32>
    %17 = math.sqrt %16 : vector<1x128xf32>
    %18 = vector.broadcast %4 : vector<1x128xf32> to vector<16x128xf32>
    %19 = arith.subf %0, %18 : vector<16x128xf32>
    %20 = vector.broadcast %14 : vector<1x128xf32> to vector<16x128xf32>
    %21 = arith.mulf %19, %20 : vector<16x128xf32>
    %c0_6 = arith.constant 0 : index
    %c0_7 = arith.constant 0 : index
    %22 = vector.load %arg3[%c0_6, %c0_7] : memref<1x128xf32, #tpu.memory_space<vmem>>, vector<1x128xf32>
    %23 = vector.broadcast %22 : vector<1x128xf32> to vector<16x128xf32>
    %24 = arith.mulf %21, %23 : vector<16x128xf32>
    %c0_8 = arith.constant 0 : index
    %c0_9 = arith.constant 0 : index
    %25 = vector.load %arg4[%c0_8, %c0_9] : memref<1x128xf32, #tpu.memory_space<vmem>>, vector<1x128xf32>
    %26 = vector.broadcast %25 : vector<1x128xf32> to vector<16x128xf32>
    %27 = arith.addf %24, %26 : vector<16x128xf32>
    %cst_10 = arith.constant 1.000000e+00 : f32
    %28 = vector.broadcast %cst_10 : f32 to vector<1x128xf32>
    %29 = tpu.concatenate %27, %28 in 0 : vector<16x128xf32>, vector<1x128xf32> -> vector<17x128xf32>
    %c0_11 = arith.constant 0 : index
    %c0_12 = arith.constant 0 : index
    %30 = vector.load %arg2[%c0_11, %c0_12] : memref<8x17xf32, #tpu.memory_space<vmem>>, vector<8x17xf32>
    %cst_13 = arith.constant dense<0.000000e+00> : vector<8x128xf32>
    %31 = tpu.matmul %30, %29, %cst_13 {dimension_numbers = #tpu.dot_dimension_numbers<[1], [0], [0], [1], [0, 0, 1, 1], [], []>} : vector<8x17xf32>, vector<17x128xf32>, vector<8x128xf32> -> vector<8x128xf32>
    %c0_14 = arith.constant 0 : index
    %c0_15 = arith.constant 0 : index
    %32 = vector.load %arg4[%c0_14, %c0_15] : memref<1x128xf32, #tpu.memory_space<vmem>>, vector<1x128xf32>
    %33 = vector.broadcast %32 : vector<1x128xf32> to vector<8x128xf32>
    %34 = arith.subf %31, %33 : vector<8x128xf32>
    %c0_16 = arith.constant 0 : index
    %c0_17 = arith.constant 0 : index
    %35 = vector.load %arg5[%c0_16, %c0_17] : memref<1x128xf32, #tpu.memory_space<vmem>>, vector<1x128xf32>
    %36 = vector.broadcast %35 : vector<1x128xf32> to vector<8x128xf32>
    %37 = arith.mulf %34, %36 : vector<8x128xf32>
    %38 = vector.broadcast %17 : vector<1x128xf32> to vector<8x128xf32>
    %39 = arith.mulf %37, %38 : vector<8x128xf32>
    %40 = vector.broadcast %4 : vector<1x128xf32> to vector<8x128xf32>
    %41 = arith.addf %39, %40 : vector<8x128xf32>
    %c0_18 = arith.constant 0 : index
    %c0_19 = arith.constant 0 : index
    %42 = vector.load %arg6[%c0_18, %c0_19] : memref<8x128xf32, #tpu.memory_space<vmem>>, vector<8x128xf32>
    tpu.vector_store %arg6[%c0_18, %c0_19], %41 {strides = array<i32>} : memref<8x128xf32, #tpu.memory_space<vmem>>, vector<8x128xf32>,
    return
  }
  func.func @transform_0(%arg0: i32) -> (i32, i32) {
    %c0_i32 = arith.constant 0 : i32
    %c0_i32_0 = arith.constant 0 : i32
    return %c0_i32, %arg0 : i32, i32
  }
  func.func @transform_1(%arg0: i32) -> (i32, i32) {
    %c0_i32 = arith.constant 0 : i32
    %c0_i32_0 = arith.constant 0 : i32
    %c0_i32_1 = arith.constant 0 : i32
    return %c0_i32, %c0_i32_0 : i32, i32
  }
  func.func @transform_2(%arg0: i32) -> (i32, i32) {
    %c0_i32 = arith.constant 0 : i32
    %c0_i32_0 = arith.constant 0 : i32
    return %c0_i32, %arg0 : i32, i32
  }
  func.func @transform_3(%arg0: i32) -> (i32, i32) {
    %c0_i32 = arith.constant 0 : i32
    %c0_i32_0 = arith.constant 0 : i32
    return %c0_i32, %arg0 : i32, i32
  }
  func.func @transform_4(%arg0: i32) -> (i32, i32) {
    %c0_i32 = arith.constant 0 : i32
    %c0_i32_0 = arith.constant 0 : i32
    return %c0_i32, %arg0 : i32, i32
  }
  func.func @transform_5(%arg0: i32) -> (i32, i32) {
    %c0_i32 = arith.constant 0 : i32
    %c0_i32_0 = arith.constant 0 : i32
    return %c0_i32, %arg0 : i32, i32
  }
}

</mosaic_0001>

<bundles_post_ra>
// kernel: tpu_custom_call.1
= control target key start
LH: loop header
LB: loop body
LE: loop exit
PB: predicated region body
PF: predicated region fallthrough
CT: control target
= control target key end

     0   :  { %10 = vsyncpa [#allocation3], 0  ;;  %s394_s0 = inlined_call_operand.hbm [shape: f32[16,128], index: 0, kind: input, shape index: {}]   ;;  %s395_s1 = inlined_call_operand.hbm [shape: f32[8,17], index: 1, kind: input, shape index: {}]   ;;  %s396_s2 = inlined_call_operand.vmem [shape: f32[1,128], index: 2, kind: input, shape index: {}]   ;;  %s397_s3 = inlined_call_operand.vmem [shape: f32[1,128], index: 3, kind: input, shape index: {}]   ;;  %s398_s4 = inlined_call_operand.vmem [shape: f32[1,128], index: 4, kind: input, shape index: {}]   ;;  %s399_s5 = inlined_call_operand.hbm [shape: f32[8,128], index: 5, kind: output, shape index: {}]  }
   0x1   :  { %11 = vsyncpa [#allocation6], 0 }
   0x2   :  { %12 = vsyncpa [#allocation4], 0  ;;  %s310_s18 = smov [#allocation2]   ;;  %s238_s22 = scalar_lea.hbm %s394_s0, 256 }
   0x3   :  { %s18_s19 = sshll.u32 %s310_s18, 4  ;;  %p239_p0 = scmp.ne.s32.totalorder %s394_s0, %s238_s22  ;;  %s19_s19 = int_to_ptr.vmem [resolvable:$true] %s18_s19 }
   0x4   :  { %p242_p1 = scmp.lt.u32.totalorder %s238_s22, %s394_s0 }
   0x6   :  { %p244_p2 = pnand %p242_p1, %p239_p0 }
   0x8   :  { %247 = shalt.err (!%p244_p2)
}
   0x9   :  { %s248_s27 = scalar_lea.vmem %s19_s19, 256  ;;  %p253_p4 = scmp.lt.s32.totalorder %s19_s19, %s19_s19 }
   0xa   :  { %p249_p3 = scmp.ne.s32.totalorder %s19_s19, %s248_s27  ;;  %p254_p5 = scmp.lt.s32.totalorder %s248_s27, %s248_s27 }
   0xc   :  { %p255_p6 = por %p254_p5, %p253_p4 }
   0xe   :  { %p256_p7 = pnand %p255_p6, %p249_p3 }
  0x10   :  { %259 = shalt.err (!%p256_p7)
}
  0x11   :  { %s311_s28 = smov 128   ;;  %s312_s29 = smov 8  }
  0x12   :  { %24 = dma.hbm_to_vmem [thread:$0]  %s394_s0, 256, %s19_s19, [#allocation3], %s311_s28, %s311_s28, %s312_s29  }
  0x13   :  { %s313_s7 = smov [#allocation5]   ;;  %s260_s11 = scalar_lea.hbm %s395_s1, 128 }
  0x14   :  { %s31_s8 = sshll.u32 %s313_s7, 4  ;;  %p261_p8 = scmp.ne.s32.totalorder %s395_s1, %s260_s11  ;;  %s32_s8 = int_to_ptr.vmem [resolvable:$true] %s31_s8 }
  0x15   :  { %p264_p9 = scmp.lt.u32.totalorder %s260_s11, %s395_s1 }
  0x17   :  { %p266_p10 = pnand %p264_p9, %p261_p8 }
  0x19   :  { %269 = shalt.err (!%p266_p10)
}
  0x1a   :  { %s270_s16 = scalar_lea.vmem %s32_s8, 128  ;;  %p275_p12 = scmp.lt.s32.totalorder %s32_s8, %s32_s8 }
  0x1b   :  { %p271_p11 = scmp.ne.s32.totalorder %s32_s8, %s270_s16  ;;  %p276_p13 = scmp.lt.s32.totalorder %s270_s16, %s270_s16 }
  0x1d   :  { %p277_p0 = por %p276_p13, %p275_p12 }
  0x1f   :  { %p278_p1 = pnand %p277_p0, %p271_p11 }
  0x21   :  { %281 = shalt.err (!%p278_p1)
}
  0x22   :  { %34 = dma.hbm_to_vmem [thread:$0]  %s395_s1, 128, %s32_s8, [#allocation6]  }
  0x23   :  { %304 = dma.done.wait [#allocation3], 256  }
  0x24   :  { %305 = vsyncadd [#allocation3], 4294967040 }
  0x25   :  { %306 = dma.done.wait [#allocation6], 128  }
  0x26   :  { %307 = vsyncadd [#allocation6], 4294967168  ;;  %v314_v0 = vmov 0.0|0.0   ;;  %vm315_vm0 = vmmov 0   ;;  %v316_v1 = vmov 0.0   ;;  %v47_v2 = vld [vmem:[#allocation2] sm:$0xff] }
  0x27   :  { %224 = vmatprep.subr.bf16.mxu0 %v314_v0  ;;  %221 = vmatprep.mubr.msk.f32.mxu0 %vm315_vm0, %v316_v1  ;;  %v48_v3 = vld [vmem:[#allocation2 + $0x8] sm:$0xff]  ;;  %v206_v26 = vld [vmem:[%s396_s2] ss:$0 sm:$0xff]  ;;  %vm104_vm3 = vcmask 1040384   ;;  %v99_v39 = vld [vmem:[#allocation5] sm:$0xff]  ;;  %vm100_vm4 = vcmask 138240  }
  0x28   :  { %v49_v4 = vadd.f32 %v48_v3, %v47_v2  ;;  %v207_v31 = vld [vmem:[%s397_s3] ss:$0 sm:$0xff]  ;;  %v317_v40 = vmov 1.0   ;;  %s318_s3 = smov [#allocation7]  }
  0x29   :  { %v210_v42 = vld [vmem:[%s398_s4] ss:$0 sm:$0xff]  ;;  %s196_s22 = sshll.u32 %s318_s3, 4  ;;  %s197_s22 = int_to_ptr.vmem [resolvable:$true] %s196_s22 }
  0x2a   :  { %v50_v5 = vrot.slane %v49_v4, 4  ;;  %s282_s23 = scalar_lea.vmem %s197_s22, 128  ;;  %p287_p3 = scmp.lt.s32.totalorder %s197_s22, %s197_s22 }
  0x2b   :  { %p283_p2 = scmp.ne.s32.totalorder %s197_s22, %s282_s23  ;;  %p288_p4 = scmp.lt.s32.totalorder %s282_s23, %s282_s23 }
  0x2c   :  { %v51_v6 = vadd.f32 %v50_v5, %v49_v4 }
  0x2d   :  { %p289_p5 = por %p288_p4, %p287_p3 }
  0x2e   :  { %v52_v7 = vrot.slane %v51_v6, 2 }
  0x2f   :  { %p290_p6 = pnand %p289_p5, %p283_p2 }
  0x30   :  { %v53_v8 = vadd.f32 %v52_v7, %v51_v6 }
  0x32   :  { %v54_v9 = vrot.slane %v53_v8, 1 }
  0x34   :  { %v55_v10 = vadd.f32 %v54_v9, %v53_v8 }
  0x36   :  { %v57_v11 = vmul.f32 0.0625, %v55_v10 }
  0x38   :  { %v58_v12 = vsub.f32 %v47_v2, %v57_v11  ;;  %v59_v13 = vsub.f32 %v48_v3, %v57_v11 }
  0x3a   :  { %v60_v14 = vmul.f32 %v58_v12, %v58_v12  ;;  %v61_v15 = vmul.f32 %v59_v13, %v59_v13 }
  0x3c   :  { %v62_v16 = vadd.f32 %v61_v15, %v60_v14 }
  0x3e   :  { %v63_v17 = vrot.slane %v62_v16, 4 }
  0x40   :  { %v64_v18 = vadd.f32 %v63_v17, %v62_v16 }
  0x42   :  { %v65_v19 = vrot.slane %v64_v18, 2 }
  0x44   :  { %v66_v20 = vadd.f32 %v65_v19, %v64_v18 }
  0x46   :  { %v67_v21 = vrot.slane %v66_v20, 1 }
  0x48   :  { %v68_v22 = vadd.f32 %v67_v21, %v66_v20 }
  0x4a   :  { %v69_v23 = vmul.f32 0.0625, %v68_v22 }
  0x4c   :  { %v70_v24 = vadd.f32 1e-05, %v69_v23 }
  0x4e   :  { %236 = vrsqrt.f32 %v70_v24  ;;  %vm74_vm1 = vcmp.eq.f32.partialorder %v70_v24, inf  ;;  %v77_v27 = vand.u32 2147483648, %v70_v24  ;;  %vm76_vm2 = vcmp.eq.f32.partialorder %v70_v24, 0.0 }
  0x58   :  { %v237_v25 = vpop.eup %236 }
  0x59   :  { %v79_v28 = vmul.f32 %v237_v25, %v58_v12  ;;  %v80_v29 = vmul.f32 %v237_v25, %v59_v13  ;;  %v73_v30 = vmul.f32 %v237_v25, %v70_v24 }
  0x5b   :  { %v88_v32 = vmul.f32 %v206_v26, %v79_v28  ;;  %v89_v33 = vmul.f32 %v206_v26, %v80_v29  ;;  %v75_v34 = vsel %vm74_vm1, %v70_v24, %v73_v30 }
  0x5c   :  { %v78_v35 = vsel %vm76_vm2, %v77_v27, %v75_v34 }
  0x5d   :  { %v97_v36 = vadd.f32 %v207_v31, %v88_v32  ;;  %v98_v37 = vadd.f32 %v207_v31, %v89_v33 }
  0x5f   :  { %v225_v38 = vpack.c.bf16 %v98_v37, %v97_v36 }
  0x61   :  { %226 = vmatpush3.bf16.msra.mxu0 %v225_v38 }
  0x62   :  { %219 = vmatprep.subr.mxu0 %v316_v1 }
  0x65   :  { %220 = vmatpush3.msk.msra.mxu0 %vm104_vm3, %v317_v40 }
  0x66   :  { %222 = vmatmul.mubr.msk.f32.vlgmr.msra.gmra.mrb[0].mxu0 %vm100_vm4, %v99_v39 }
 0x139   :  { %v174_v41 = vpop.f32.mrb[0].mxu0 }
 0x13a   :  { %v178_v43 = vsub.f32 %v174_v41, %v207_v31  ;;  %v223_v44 = vpop.f32.mrb[1].mxu0 }
 0x13c   :  { %v186_v45 = vmul.f32 %v210_v42, %v178_v43 }
 0x13e   :  { %v187_v46 = vmul.f32 %v186_v45, %v78_v35 }
 0x140   :  { %v188_v47 = vadd.f32 %v187_v46, %v57_v11 }
 0x142   :  { %189 = vst [vmem:[#allocation7] sm:$0xff] %v188_v47 }
 0x143   :  { %293 = shalt.err (!%p290_p6)
}
 0x144   :  { %s294_s4 = scalar_lea.hbm %s399_s5, 128 }
 0x145   :  { %p295_p7 = scmp.ne.s32.totalorder %s399_s5, %s294_s4  ;;  %p298_p8 = scmp.lt.u32.totalorder %s294_s4, %s399_s5 }
 0x147   :  { %p300_p9 = pnand %p298_p8, %p295_p7 }
 0x149   :  { %303 = shalt.err (!%p300_p9)
}
 0x14a   :  { %199 = dma.vmem_to_hbm [thread:$0]  %s197_s22, 128, %s399_s5, [#allocation4]  }
 0x14b   :  { %308 = dma.done.wait [#allocation4], 128  }
 0x14c   :  { %309 = vsyncadd [#allocation4], 4294967168 }
 0x14d   :  { %203 = vsyncpa [#allocation3], 1 }
 0x14e   :  { %204 = vsyncpa [#allocation6], 1 }
 0x14f   :  { %205 = vsyncpa [#allocation4], 1 }

</bundles_post_ra>
